<compile_context>
chip_gen: v5e
topology: v5e:2x2
jax: 0.10.0
libtpu: 0.0.40
codegen_flags: <defaults>
</compile_context>

<pallas_src>
import functools

import jax
import jax.numpy as jnp
from jax.experimental import pallas as pl
from jax.experimental.pallas import tpu as pltpu

LANES = 128      # TPU vreg lane width — hidden feature dims padded to this.
SUBLANES = 8     # f32 sublane granularity — batch tiles rounded to this.


def _cdiv(a, b):
    return (a + b - 1) // b


def _round_up(x, m):
    return _cdiv(x, m) * m


def _fused_mlp_kernel(x_ref, w_ref, b_ref, o_ref, *, num_layers, in_dim, out_dim):
    """Fused (Linear + ReLU) * (num_layers-1) + final Linear.

    x_ref: (B_tile, in_dim)        input activations at natural width
    w_ref: (L, LANES, LANES)       stacked zero-padded weights (VMEM-resident)
    b_ref: (L, 1, LANES)           stacked zero-padded biases (f32)
    o_ref: (B_tile, out_dim)       output at natural width
    """
    compute_dtype = w_ref.dtype
    h = x_ref[...].astype(compute_dtype)
    # num_layers is small and static -> plain Python loop (fully unrolled).
    for layer in range(num_layers):
        if layer == 0:
            # Contract only over the real input features (in_dim is
            # sublane-aligned for the demo shapes); padded lanes never enter.
            w = w_ref[0, :in_dim, :]
        else:
            w = w_ref[layer]
        h = jnp.dot(h.astype(compute_dtype), w,
                    preferred_element_type=jnp.float32) + b_ref[layer]
        if layer != num_layers - 1:
            h = jnp.maximum(h, 0.0)          # ReLU in f32
    # Only the first out_dim lanes are meaningful — store natural width.
    o_ref[...] = h[:, :out_dim].astype(o_ref.dtype)


def _prepack_params(params, compute_dtype):
    """One-time zero-pad + stack of all layer weights/biases (done at init)."""
    num_layers = len(params)
    w_all = jnp.zeros((num_layers, LANES, LANES), compute_dtype)
    b_all = jnp.zeros((num_layers, 1, LANES), jnp.float32)
    for i, (w, b) in enumerate(params):
        fi, fo = w.shape
        w_all = w_all.at[i, :fi, :fo].set(w.astype(compute_dtype))
        b_all = b_all.at[i, 0, :fo].set(b.astype(jnp.float32))
    return w_all, b_all


def _compute_batch_tiling(batch, max_batch_tile):
    # Aim for >= 2 grid steps at medium/large batches so the "parallel" batch
    # axis can shard across both TensorCores on v7x (harmless on v5e/v6e).
    half = _round_up(_cdiv(batch, 2), SUBLANES)
    b_tile = max(SUBLANES, min(max_batch_tile, half))
    b_pad = _round_up(batch, b_tile)
    return b_tile, b_pad


def _mlp_forward(w_all, b_all, x, *, num_layers, in_dim, out_dim, max_batch_tile):
    batch = x.shape[0]
    orig_dtype = x.dtype

    b_tile, b_pad = _compute_batch_tiling(batch, max_batch_tile)
    if b_pad != batch:
        x_in = jnp.zeros((b_pad, in_dim), x.dtype).at[:batch].set(x)
    else:
        x_in = x

    vmem = pltpu.MemorySpace.VMEM
    grid = (b_pad // b_tile,)

    out = pl.pallas_call(
        functools.partial(_fused_mlp_kernel, num_layers=num_layers,
                          in_dim=in_dim, out_dim=out_dim),
        out_shape=jax.ShapeDtypeStruct((b_pad, out_dim), jnp.float32),
        grid=grid,
        in_specs=[
            # activations at natural width, tiled over the (parallel) batch axis
            pl.BlockSpec((b_tile, in_dim), lambda i: (i, 0), memory_space=vmem),
            # weights / biases: constant index_map -> fetched once, VMEM-resident
            pl.BlockSpec((num_layers, LANES, LANES), lambda i: (0, 0, 0),
                         memory_space=vmem),
            pl.BlockSpec((num_layers, 1, LANES), lambda i: (0, 0, 0),
                         memory_space=vmem),
        ],
        out_specs=pl.BlockSpec((b_tile, out_dim), lambda i: (i, 0),
                               memory_space=vmem),
        compiler_params=pltpu.CompilerParams(
            dimension_semantics=("parallel",)),
    )(x_in, w_all, b_all)

    if b_pad != batch:
        out = out[:batch]
    return out.astype(orig_dtype)


def make_mlp_forward(params, *, compute_dtype=jnp.bfloat16, max_batch_tile=1024):
    """Prepack params once and return a jitted forward(x) closure.

    params: list of (w, b) with w: (in_features, out_features), b: (out_features,)
    compute_dtype: matmul input dtype (bf16 default; f32 accumulation always).
    """
    num_layers = len(params)
    in_dim = params[0][0].shape[0]
    out_dim = params[-1][0].shape[1]
    w_all, b_all = _prepack_params(params, compute_dtype)

    @jax.jit
    def forward(x):
        return _mlp_forward(w_all, b_all, x,
                            num_layers=num_layers, in_dim=in_dim,
                            out_dim=out_dim, max_batch_tile=max_batch_tile)

    return forward


def init_mlp_params(key, input_dim, output_dim, num_hidden_layers, hidden_size,
                    dtype=jnp.float32):
    """Deterministic init mimicking PyTorch nn.Linear default U(-1/sqrt(fan_in), +)."""
    dims = [input_dim] + [hidden_size] * (num_hidden_layers + 1) + [output_dim]
    params = []
    for i in range(len(dims) - 1):
        fan_in, fan_out = dims[i], dims[i + 1]
        key, kw, kb = jax.random.split(key, 3)
        bound = 1.0 / jnp.sqrt(jnp.asarray(fan_in, dtype))
        w = jax.random.uniform(kw, (fan_in, fan_out), dtype, -bound, bound)
        b = jax.random.uniform(kb, (fan_out,), dtype, -bound, bound)
        params.append((w, b))
    return params


if __name__ == "__main__":
    # MLPNetwork(input_dim=16, output_dim=4, num_hidden_layers=2, hidden_size=32), batch=8.
    input_dim, output_dim, num_hidden_layers, hidden_size = 16, 4, 2, 32
    batch = 8

    key = jax.random.PRNGKey(0)
    key, kx = jax.random.split(key)
    x = jax.random.normal(kx, (batch, input_dim), jnp.float32)

    params = init_mlp_params(key, input_dim, output_dim, num_hidden_layers,
                             hidden_size)

    # Pure-JAX reference (f32, highest precision).
    ref = x
    for i, (w, b) in enumerate(params):
        ref = jnp.dot(ref, w, precision=jax.lax.Precision.HIGHEST) + b
        if i != len(params) - 1:
            ref = jnp.maximum(ref, 0.0)

    # f32 compute path: should match the reference tightly.
    fwd_f32 = make_mlp_forward(params, compute_dtype=jnp.float32)
    out_f32 = jax.block_until_ready(fwd_f32(x))
    assert out_f32.shape == (batch, output_dim)
    assert jnp.allclose(out_f32, ref, atol=1e-4, rtol=1e-4)

    # bf16-input / f32-accumulate path (default, MXU-friendly on v5e/v6e):
    # small rounding error is expected -> looser tolerance.
    fwd_bf16 = make_mlp_forward(params, compute_dtype=jnp.bfloat16)
    out_bf16 = jax.block_until_ready(fwd_bf16(x))
    assert out_bf16.shape == (batch, output_dim)
    assert jnp.allclose(out_bf16, ref, atol=3e-2, rtol=3e-2)

    print("KERNEL_OK")
</pallas_src>

<mosaic_0001>
module attributes {stable_mosaic.version = 11 : i64} {
  func.func @_fused_mlp_kernel(%arg0: i32, %arg1: memref<8x16xf32, #tpu.memory_space<vmem>>, %arg2: memref<4x128x128xf32, #tpu.memory_space<vmem>>, %arg3: memref<4x1x128xf32, #tpu.memory_space<vmem>>, %arg4: memref<8x4xf32, #tpu.memory_space<vmem>>) attributes {dimension_semantics = [#tpu.dimension_semantics<parallel>], iteration_bounds = array<i64: 1>, scalar_prefetch = 0 : i64, scratch_operands = 0 : i64, tpu.core_type = #tpu.core_type<tc>, window_params = [{transform_indices = @transform_0, window_bounds = array<i64: 8, 16>}, {pipeline_mode = #tpu.pipeline_mode<synchronous>, transform_indices = @transform_1, window_bounds = array<i64: 4, 128, 128>}, {pipeline_mode = #tpu.pipeline_mode<synchronous>, transform_indices = @transform_2, window_bounds = array<i64: 4, 1, 128>}, {transform_indices = @transform_3, window_bounds = array<i64: 8, 4>}]} {
    %c0 = arith.constant 0 : index
    %c0_0 = arith.constant 0 : index
    %0 = vector.load %arg1[%c0, %c0_0] : memref<8x16xf32, #tpu.memory_space<vmem>>, vector<8x16xf32>
    %c0_1 = arith.constant 0 : index
    %c0_2 = arith.constant 0 : index
    %c0_3 = arith.constant 0 : index
    %1 = vector.load %arg2[%c0_1, %c0_2, %c0_3] : memref<4x128x128xf32, #tpu.memory_space<vmem>>, vector<1x16x128xf32>
    %2 = vector.shape_cast %1 : vector<1x16x128xf32> to vector<16x128xf32>
    %cst = arith.constant dense<0.000000e+00> : vector<8x128xf32>
    %3 = tpu.matmul %0, %2, %cst {dimension_numbers = #tpu.dot_dimension_numbers<[1], [0], [0], [1], [0, 0, 1, 1], [], []>} : vector<8x16xf32>, vector<16x128xf32>, vector<8x128xf32> -> vector<8x128xf32>
    %c0_4 = arith.constant 0 : index
    %c0_5 = arith.constant 0 : index
    %c0_6 = arith.constant 0 : index
    %4 = vector.load %arg3[%c0_4, %c0_5, %c0_6] : memref<4x1x128xf32, #tpu.memory_space<vmem>>, vector<1x1x128xf32>
    %5 = vector.shape_cast %4 : vector<1x1x128xf32> to vector<1x128xf32>
    %6 = vector.broadcast %5 : vector<1x128xf32> to vector<8x128xf32>
    %7 = arith.addf %3, %6 : vector<8x128xf32>
    %cst_7 = arith.constant 0.000000e+00 : f32
    %8 = vector.broadcast %cst_7 : f32 to vector<8x128xf32>
    %9 = arith.maximumf %7, %8 : vector<8x128xf32>
    %c1 = arith.constant 1 : index
    %c0_8 = arith.constant 0 : index
    %c0_9 = arith.constant 0 : index
    %10 = vector.load %arg2[%c1, %c0_8, %c0_9] : memref<4x128x128xf32, #tpu.memory_space<vmem>>, vector<1x128x128xf32>
    %11 = vector.shape_cast %10 : vector<1x128x128xf32> to vector<128x128xf32>
    %cst_10 = arith.constant dense<0.000000e+00> : vector<8x128xf32>
    %12 = tpu.matmul %9, %11, %cst_10 {dimension_numbers = #tpu.dot_dimension_numbers<[1], [0], [0], [1], [0, 0, 1, 1], [], []>} : vector<8x128xf32>, vector<128x128xf32>, vector<8x128xf32> -> vector<8x128xf32>
    %c1_11 = arith.constant 1 : index
    %c0_12 = arith.constant 0 : index
    %c0_13 = arith.constant 0 : index
    %13 = vector.load %arg3[%c1_11, %c0_12, %c0_13] : memref<4x1x128xf32, #tpu.memory_space<vmem>>, vector<1x1x128xf32>
    %14 = vector.shape_cast %13 : vector<1x1x128xf32> to vector<1x128xf32>
    %15 = vector.broadcast %14 : vector<1x128xf32> to vector<8x128xf32>
    %16 = arith.addf %12, %15 : vector<8x128xf32>
    %cst_14 = arith.constant 0.000000e+00 : f32
    %17 = vector.broadcast %cst_14 : f32 to vector<8x128xf32>
    %18 = arith.maximumf %16, %17 : vector<8x128xf32>
    %c2 = arith.constant 2 : index
    %c0_15 = arith.constant 0 : index
    %c0_16 = arith.constant 0 : index
    %19 = vector.load %arg2[%c2, %c0_15, %c0_16] : memref<4x128x128xf32, #tpu.memory_space<vmem>>, vector<1x128x128xf32>
    %20 = vector.shape_cast %19 : vector<1x128x128xf32> to vector<128x128xf32>
    %cst_17 = arith.constant dense<0.000000e+00> : vector<8x128xf32>
    %21 = tpu.matmul %18, %20, %cst_17 {dimension_numbers = #tpu.dot_dimension_numbers<[1], [0], [0], [1], [0, 0, 1, 1], [], []>} : vector<8x128xf32>, vector<128x128xf32>, vector<8x128xf32> -> vector<8x128xf32>
    %c2_18 = arith.constant 2 : index
    %c0_19 = arith.constant 0 : index
    %c0_20 = arith.constant 0 : index
    %22 = vector.load %arg3[%c2_18, %c0_19, %c0_20] : memref<4x1x128xf32, #tpu.memory_space<vmem>>, vector<1x1x128xf32>
    %23 = vector.shape_cast %22 : vector<1x1x128xf32> to vector<1x128xf32>
    %24 = vector.broadcast %23 : vector<1x128xf32> to vector<8x128xf32>
    %25 = arith.addf %21, %24 : vector<8x128xf32>
    %cst_21 = arith.constant 0.000000e+00 : f32
    %26 = vector.broadcast %cst_21 : f32 to vector<8x128xf32>
    %27 = arith.maximumf %25, %26 : vector<8x128xf32>
    %c3 = arith.constant 3 : index
    %c0_22 = arith.constant 0 : index
    %c0_23 = arith.constant 0 : index
    %28 = vector.load %arg2[%c3, %c0_22, %c0_23] : memref<4x128x128xf32, #tpu.memory_space<vmem>>, vector<1x128x128xf32>
    %29 = vector.shape_cast %28 : vector<1x128x128xf32> to vector<128x128xf32>
    %cst_24 = arith.constant dense<0.000000e+00> : vector<8x128xf32>
    %30 = tpu.matmul %27, %29, %cst_24 {dimension_numbers = #tpu.dot_dimension_numbers<[1], [0], [0], [1], [0, 0, 1, 1], [], []>} : vector<8x128xf32>, vector<128x128xf32>, vector<8x128xf32> -> vector<8x128xf32>
    %c3_25 = arith.constant 3 : index
    %c0_26 = arith.constant 0 : index
    %c0_27 = arith.constant 0 : index
    %31 = vector.load %arg3[%c3_25, %c0_26, %c0_27] : memref<4x1x128xf32, #tpu.memory_space<vmem>>, vector<1x1x128xf32>
    %32 = vector.shape_cast %31 : vector<1x1x128xf32> to vector<1x128xf32>
    %33 = vector.broadcast %32 : vector<1x128xf32> to vector<8x128xf32>
    %34 = arith.addf %30, %33 : vector<8x128xf32>
    %35 = vector.extract_strided_slice %34 {offsets = [0, 0], sizes = [8, 4], strides = [1, 1]} : vector<8x128xf32> to vector<8x4xf32>
    %c0_28 = arith.constant 0 : index
    %c0_29 = arith.constant 0 : index
    %36 = vector.load %arg4[%c0_28, %c0_29] : memref<8x4xf32, #tpu.memory_space<vmem>>, vector<8x4xf32>
    tpu.vector_store %arg4[%c0_28, %c0_29], %35 {strides = array<i32>} : memref<8x4xf32, #tpu.memory_space<vmem>>, vector<8x4xf32>,
    return
  }
  func.func @transform_0(%arg0: i32) -> (i32, i32) {
    %c0_i32 = arith.constant 0 : i32
    %c0_i32_0 = arith.constant 0 : i32
    return %arg0, %c0_i32 : i32, i32
  }
  func.func @transform_1(%arg0: i32) -> (i32, i32, i32) {
    %c0_i32 = arith.constant 0 : i32
    %c0_i32_0 = arith.constant 0 : i32
    %c0_i32_1 = arith.constant 0 : i32
    %c0_i32_2 = arith.constant 0 : i32
    return %c0_i32, %c0_i32_0, %c0_i32_1 : i32, i32, i32
  }
  func.func @transform_2(%arg0: i32) -> (i32, i32, i32) {
    %c0_i32 = arith.constant 0 : i32
    %c0_i32_0 = arith.constant 0 : i32
    %c0_i32_1 = arith.constant 0 : i32
    %c0_i32_2 = arith.constant 0 : i32
    return %c0_i32, %c0_i32_0, %c0_i32_1 : i32, i32, i32
  }
  func.func @transform_3(%arg0: i32) -> (i32, i32) {
    %c0_i32 = arith.constant 0 : i32
    %c0_i32_0 = arith.constant 0 : i32
    return %arg0, %c0_i32 : i32, i32
  }
}

</mosaic_0001>

<bundles_post_ra>
// kernel: forward.1
= control target key start
LH: loop header
LB: loop body
LE: loop exit
PB: predicated region body
PF: predicated region fallthrough
CT: control target
= control target key end

     0   :  { %8 = vsyncpa [#allocation3], 0  ;;  %s354_s0 = inlined_call_operand.hbm [shape: f32[8,16], index: 0, kind: input, shape index: {}]   ;;  %s355_s1 = inlined_call_operand.hbm [shape: f32[4,128,128], index: 1, kind: input, shape index: {}]   ;;  %s356_s2 = inlined_call_operand.hbm [shape: f32[4,1,128], index: 2, kind: input, shape index: {}]   ;;  %s357_s3 = inlined_call_operand.vmem [shape: f32[8,4], index: 3, kind: output, shape index: {}]  }
   0x1   :  { %9 = vsyncpa [#allocation5], 0  ;;  %s25_s14 = sshll.u32 %s355_s1, 4  ;;  %s315_s15 = smov [#allocation4]   ;;  %s26_s14 = int_to_ptr.hbm [resolvable:$true] %s25_s14 }
   0x2   :  { %s27_s16 = sshll.u32 %s315_s15, 4  ;;  %s15_s19 = sshll.u32 %s354_s0, 4  ;;  %s28_s16 = int_to_ptr.vmem [resolvable:$true] %s27_s16  ;;  %s16_s19 = int_to_ptr.hbm [resolvable:$true] %s15_s19 }
   0x3   :  { %s316_s20 = smov 128   ;;  %s317_s21 = smov 8  }
   0x4   :  { %33 = dma.hbm_to_vmem [thread:$0]  %s26_s14, 8192, %s28_s16, [#allocation5], %s316_s20, %s316_s20, %s317_s21  }
   0x5   :  { %s318_s22 = smov [#allocation2]   ;;  %s38_s26 = sshll.u32 %s356_s2, 4  ;;  %s39_s26 = int_to_ptr.hbm [resolvable:$true] %s38_s26 }
   0x6   :  { %s17_s23 = sshll.u32 %s318_s22, 4  ;;  %s319_s1 = smov [#allocation6]   ;;  %s18_s23 = int_to_ptr.vmem [resolvable:$true] %s17_s23 }
   0x7   :  { %20 = dma.hbm_to_vmem [thread:$0]  %s16_s19, 128, %s18_s23, [#allocation3]  }
   0x8   :  { %s40_s27 = sshll.u32 %s319_s1, 4  ;;  %s320_s28 = smov 16   ;;  %s41_s27 = int_to_ptr.vmem [resolvable:$true] %s40_s27 }
   0x9   :  { %s321_s29 = smov 1  }
   0xa   :  { %46 = dma.hbm_to_vmem [thread:$0]  %s39_s26, 64, %s41_s27, [#allocation5], %s320_s28, %s320_s28, %s321_s29  }
   0xb   :  { %311 = dma.done.wait [#allocation3], 128  }
   0xc   :  { %312 = vsyncadd [#allocation3], 4294967168 }
   0xd   :  { %313 = dma.done.wait [#allocation5], 8256  }
   0xe   :  { %314 = vsyncadd [#allocation5], 4294959040  ;;  %v61_v0 = vld [vmem:[#allocation4 + $0x8] sm:$0xff]  ;;  %v60_v1 = vld [vmem:[#allocation4] sm:$0xff]  ;;  %vm66_vm0 = vcmask 130048   ;;  %vm219_vm1 = vcmask 31744  }
   0xf   :  { %84 = vmatpush.msra.mxu0 %v61_v0  ;;  %v59_v2 = vld [vmem:[#allocation2] sm:$0xff]  ;;  %v106_v4 = vld [vmem:[#allocation4 + $0xf0] sm:$0xff]  ;;  %v105_v5 = vld [vmem:[#allocation4 + $0xe8] sm:$0xff] }
  0x10   :  { %v107_v3 = vld [vmem:[#allocation4 + $0xf8] sm:$0xff]  ;;  %v104_v6 = vld [vmem:[#allocation4 + $0xe0] sm:$0xff]  ;;  %v102_v8 = vld [vmem:[#allocation4 + $0xd0] sm:$0xff] }
  0x11   :  { %113 = vmatpush.msra.mxu1 %v107_v3  ;;  %85 = vmatpush.msra.mxu0 %v60_v1  ;;  %v103_v7 = vld [vmem:[#allocation4 + $0xd8] sm:$0xff]  ;;  %v101_v9 = vld [vmem:[#allocation4 + $0xc8] sm:$0xff]  ;;  %v100_v10 = vld [vmem:[#allocation4 + $0xc0] sm:$0xff] }
  0x12   :  { %227 = vmatmul.msk.f32.vlgmr.msra.gmra.mxu0 %vm66_vm0, %v59_v2  ;;  %v99_v11 = vld [vmem:[#allocation4 + $0xb8] sm:$0xff]  ;;  %v98_v12 = vld [vmem:[#allocation4 + $0xb0] sm:$0xff]  ;;  %v97_v13 = vld [vmem:[#allocation4 + $0xa8] sm:$0xff] }
  0x13   :  { %114 = vmatpush.msra.mxu1 %v106_v4  ;;  %v96_v14 = vld [vmem:[#allocation4 + $0xa0] sm:$0xff]  ;;  %v95_v15 = vld [vmem:[#allocation4 + $0x98] sm:$0xff]  ;;  %v94_v16 = vld [vmem:[#allocation4 + $0x90] sm:$0xff] }
  0x14   :  { %v93_v17 = vld [vmem:[#allocation4 + $0x88] sm:$0xff]  ;;  %v92_v18 = vld [vmem:[#allocation4 + $0x80] sm:$0xff]  ;;  %v150_v19 = vld [vmem:[#allocation4 + $0x178] sm:$0xff] }
  0x15   :  { %115 = vmatpush.msra.mxu1 %v105_v5  ;;  %v149_v20 = vld [vmem:[#allocation4 + $0x170] sm:$0xff]  ;;  %156 = vmatpush.msra.mxu2 %v150_v19  ;;  %v148_v21 = vld [vmem:[#allocation4 + $0x168] sm:$0xff]  ;;  %v147_v22 = vld [vmem:[#allocation4 + $0x160] sm:$0xff] }
  0x16   :  { %v146_v23 = vld [vmem:[#allocation4 + $0x158] sm:$0xff]  ;;  %v145_v24 = vld [vmem:[#allocation4 + $0x150] sm:$0xff]  ;;  %v144_v25 = vld [vmem:[#allocation4 + $0x148] sm:$0xff] }
  0x17   :  { %116 = vmatpush.msra.mxu1 %v104_v6  ;;  %157 = vmatpush.msra.mxu2 %v149_v20  ;;  %v143_v26 = vld [vmem:[#allocation4 + $0x140] sm:$0xff]  ;;  %v142_v27 = vld [vmem:[#allocation4 + $0x138] sm:$0xff]  ;;  %v141_v28 = vld [vmem:[#allocation4 + $0x130] sm:$0xff] }
  0x18   :  { %v140_v29 = vld [vmem:[#allocation4 + $0x128] sm:$0xff]  ;;  %v139_v30 = vld [vmem:[#allocation4 + $0x120] sm:$0xff]  ;;  %v138_v31 = vld [vmem:[#allocation4 + $0x118] sm:$0xff] }
  0x19   :  { %117 = vmatpush.msra.mxu1 %v103_v7  ;;  %158 = vmatpush.msra.mxu2 %v148_v21  ;;  %v235_v32 = vld [vmem:[#allocation6] ss:$0 sm:$0xff]  ;;  %v137_v36 = vld [vmem:[#allocation4 + $0x110] sm:$0xff]  ;;  %v136_v37 = vld [vmem:[#allocation4 + $0x108] sm:$0xff] }
  0x1a   :  { %v135_v38 = vld [vmem:[#allocation4 + $0x100] sm:$0xff]  ;;  %v193_v39 = vld [vmem:[#allocation4 + $0x1f8] sm:$0xff]  ;;  %v192_v40 = vld [vmem:[#allocation4 + $0x1f0] sm:$0xff] }
  0x1b   :  { %118 = vmatpush.msra.mxu1 %v102_v8  ;;  %159 = vmatpush.msra.mxu2 %v147_v22  ;;  %v191_v41 = vld [vmem:[#allocation4 + $0x1e8] sm:$0xff]  ;;  %v190_v42 = vld [vmem:[#allocation4 + $0x1e0] sm:$0xff]  ;;  %v189_v43 = vld [vmem:[#allocation4 + $0x1d8] sm:$0xff] }
  0x1c   :  { %199 = vmatpush.msra.mxu3 %v193_v39  ;;  %v188_v44 = vld [vmem:[#allocation4 + $0x1d0] sm:$0xff]  ;;  %v187_v45 = vld [vmem:[#allocation4 + $0x1c8] sm:$0xff]  ;;  %v186_v46 = vld [vmem:[#allocation4 + $0x1c0] sm:$0xff] }
  0x1d   :  { %119 = vmatpush.msra.mxu1 %v101_v9  ;;  %160 = vmatpush.msra.mxu2 %v146_v23  ;;  %v185_v47 = vld [vmem:[#allocation4 + $0x1b8] sm:$0xff]  ;;  %v184_v48 = vld [vmem:[#allocation4 + $0x1b0] sm:$0xff]  ;;  %v183_v49 = vld [vmem:[#allocation4 + $0x1a8] sm:$0xff] }
  0x1e   :  { %200 = vmatpush.msra.mxu3 %v192_v40  ;;  %v182_v50 = vld [vmem:[#allocation4 + $0x1a0] sm:$0xff]  ;;  %v181_v51 = vld [vmem:[#allocation4 + $0x198] sm:$0xff]  ;;  %v180_v56 = vld [vmem:[#allocation4 + $0x190] sm:$0xff] }
  0x1f   :  { %120 = vmatpush.msra.mxu1 %v100_v10  ;;  %161 = vmatpush.msra.mxu2 %v145_v24  ;;  %v236_v52 = vld [vmem:[#allocation6 + $0x1] ss:$0 sm:$0xff]  ;;  %v179_v57 = vld [vmem:[#allocation4 + $0x188] sm:$0xff]  ;;  %v237_v59 = vld [vmem:[#allocation6 + $0x2] ss:$0 sm:$0xff] }
  0x20   :  { %201 = vmatpush.msra.mxu3 %v191_v41  ;;  %v178_v58 = vld [vmem:[#allocation4 + $0x180] sm:$0xff] }
  0x21   :  { %121 = vmatpush.msra.mxu1 %v99_v11  ;;  %162 = vmatpush.msra.mxu2 %v144_v25  ;;  %v238_v63 = vld [vmem:[#allocation6 + $0x3] ss:$0 sm:$0xff] }
  0x22   :  { %202 = vmatpush.msra.mxu3 %v190_v42 }
  0x23   :  { %122 = vmatpush.msra.mxu1 %v98_v12  ;;  %163 = vmatpush.msra.mxu2 %v143_v26 }
  0x24   :  { %203 = vmatpush.msra.mxu3 %v189_v43 }
  0x25   :  { %123 = vmatpush.msra.mxu1 %v97_v13  ;;  %164 = vmatpush.msra.mxu2 %v142_v27 }
  0x26   :  { %204 = vmatpush.msra.mxu3 %v188_v44 }
  0x27   :  { %124 = vmatpush.msra.mxu1 %v96_v14  ;;  %165 = vmatpush.msra.mxu2 %v141_v28 }
  0x28   :  { %205 = vmatpush.msra.mxu3 %v187_v45 }
  0x29   :  { %125 = vmatpush.msra.mxu1 %v95_v15  ;;  %166 = vmatpush.msra.mxu2 %v140_v29 }
  0x2a   :  { %206 = vmatpush.msra.mxu3 %v186_v46 }
  0x2b   :  { %126 = vmatpush.msra.mxu1 %v94_v16  ;;  %167 = vmatpush.msra.mxu2 %v139_v30 }
  0x2c   :  { %207 = vmatpush.msra.mxu3 %v185_v47 }
  0x2d   :  { %127 = vmatpush.msra.mxu1 %v93_v17  ;;  %168 = vmatpush.msra.mxu2 %v138_v31 }
  0x2e   :  { %208 = vmatpush.msra.mxu3 %v184_v48 }
  0x2f   :  { %128 = vmatpush.msra.mxu1 %v92_v18  ;;  %169 = vmatpush.msra.mxu2 %v137_v36 }
  0x30   :  { %209 = vmatpush.msra.mxu3 %v183_v49 }
  0x31   :  { %170 = vmatpush.msra.mxu2 %v136_v37 }
  0x32   :  { %210 = vmatpush.msra.mxu3 %v182_v50 }
  0x33   :  { %171 = vmatpush.msra.mxu2 %v135_v38 }
  0x34   :  { %211 = vmatpush.msra.mxu3 %v181_v51 }
  0x36   :  { %212 = vmatpush.msra.mxu3 %v180_v56 }
  0x38   :  { %213 = vmatpush.msra.mxu3 %v179_v57 }
  0x3a   :  { %214 = vmatpush.msra.mxu3 %v178_v58 }
  0x8f   :  { %v87_v33 = vpop.f32.mrf.mxu0 }
  0x90   :  { %v88_v34 = vadd.f32 %v235_v32, %v87_v33 }
  0x92   :  { %v90_v35 = vmax.f32 %v88_v34, 0.0 }
  0x94   :  { %129 = vmatmul.f32.vlgmr.msra.gmra.mxu1 %v90_v35 }
 0x111   :  { %v130_v53 = vpop.f32.mrf.mxu1 }
 0x112   :  { %v131_v54 = vadd.f32 %v236_v52, %v130_v53 }
 0x114   :  { %v133_v55 = vmax.f32 %v131_v54, 0.0 }
 0x116   :  { %172 = vmatmul.f32.vlgmr.msra.gmra.mxu2 %v133_v55 }
 0x199   :  { %v173_v60 = vpop.f32.mrf.mxu2 }
 0x19a   :  { %v174_v61 = vadd.f32 %v237_v59, %v173_v60 }
 0x19c   :  { %v176_v62 = vmax.f32 %v174_v61, 0.0 }
 0x19e   :  { %215 = vmatmul.f32.vlgmr.msra.gmra.mxu3 %v176_v62 }
 0x221   :  { %v216_v0 = vpop.f32.mrf.mxu3 }
 0x222   :  { %v217_v1 = vadd.f32 %v238_v63, %v216_v0 }
 0x224   :  { %220 = vst.msk [vmem:[%s357_s3] sm:$0xff] %vm219_vm1, %v217_v1 }
 0x225   :  { %225 = vsyncpa [#allocation3], 1 }
 0x226   :  { %226 = vsyncpa [#allocation5], 1 }

</bundles_post_ra>
